<compile_context>
chip_gen: v6e
topology: v6e:2x2x1
jax: 0.10.0
libtpu: 0.0.40
codegen_flags: <defaults>
</compile_context>

<pallas_src>
import math
import functools

import jax
import jax.numpy as jnp
from jax import lax
from jax.experimental import pallas as pl
from jax.experimental.pallas import tpu as pltpu


def _round_up(x: int, m: int) -> int:
    return (x + m - 1) // m * m


def _cdiv(a: int, b: int) -> int:
    return (a + b - 1) // b


@functools.lru_cache(maxsize=1)
def _vmem_capacity_bytes() -> int:
    """Per-core physical VMEM; conservative (v7x-sized) fallback."""
    try:
        info = pltpu.get_tpu_info()
        v = int(getattr(info, "vmem_capacity_bytes", 0) or 0)
        if v > 0:
            return v
    except Exception:
        pass
    try:
        kind = jax.devices()[0].device_kind.lower()
    except Exception:
        kind = ""
    if any(t in kind for t in ("v4", "v5 lite", "v5e", "v5litepod", "v6", "trillium")):
        return 128 * 1024 * 1024
    return 64 * 1024 * 1024  # v7x / unknown: conservative


def _block_spec(shape, index_map, buffers=None):
    """BlockSpec with optional deeper pipelining; falls back to double buffer."""
    if buffers is not None and buffers > 2 and hasattr(pl, "Buffered"):
        try:
            return pl.BlockSpec(shape, index_map, pipeline_mode=pl.Buffered(buffers))
        except TypeError:
            pass
    return pl.BlockSpec(shape, index_map)


# ---------------------------------------------------------------------------
# Kernels
# ---------------------------------------------------------------------------

def _decoder_kernel_single_pass(x_ref, v_ref, b_ref, o_ref, *, compute_dtype, approx):
    """One (j, i) output tile; whole K reduction in a single MXU dot.

    x_ref: (tm, K)   native input dtype (cast to compute dtype here)
    v_ref: (tn, K)   weight in native (out, in) layout -- contract last dims
    b_ref: (1, tn)   bias row
    o_ref: (tm, tn)  output tile
    """
    # TODO(synk): confirm via pl.lower_as_mlir that the NT-style dot_general
    # does not materialize a per-tile vxpose of the V tile; if it does,
    # pre-transpose V offline once to (K, N).
    z = lax.dot_general(
        x_ref[...].astype(compute_dtype), v_ref[...].astype(compute_dtype),
        dimension_numbers=(((1,), (1,)), ((), ())),
        preferred_element_type=jnp.float32,
    )
    z = z + b_ref[...].astype(jnp.float32)
    # sigmoid = 1 / (1 + exp(-z)); exp and reciprocal both run on the EUP slot.
    o_ref[...] = pl.reciprocal(1.0 + jnp.exp(-z), approx=approx).astype(o_ref.dtype)


def _decoder_kernel_ktiled(x_ref, v_ref, b_ref, o_ref, acc_ref, *, compute_dtype, approx):
    """Fallback for very large in_features: K tiled on the last grid axis."""
    k = pl.program_id(2)

    @pl.when(k == 0)
    def _():
        acc_ref[...] = jnp.zeros_like(acc_ref)

    acc_ref[...] += lax.dot_general(
        x_ref[...].astype(compute_dtype), v_ref[...].astype(compute_dtype),
        dimension_numbers=(((1,), (1,)), ((), ())),
        preferred_element_type=jnp.float32,
    )

    @pl.when(k == pl.num_programs(2) - 1)
    def _():
        z = acc_ref[...] + b_ref[...].astype(jnp.float32)
        o_ref[...] = pl.reciprocal(1.0 + jnp.exp(-z), approx=approx).astype(o_ref.dtype)


# ---------------------------------------------------------------------------
# Wrapper
# ---------------------------------------------------------------------------

def prepare_decoder_params(V, b, compute_dtype=jnp.bfloat16):
    """One-time (outside the per-step jit) weight prep so repeated calls read
    2 B/elt of weight from HBM instead of 4 B/elt."""
    return V.astype(compute_dtype), b.astype(jnp.float32)


@functools.partial(
    jax.jit, static_argnames=("tm", "tn", "tk", "compute_dtype", "out_dtype"))
def decoder_forward(x, V, b, *, tm=None, tn=None, tk=None,
                    compute_dtype=jnp.bfloat16, out_dtype=None):
    """sigmoid(x @ V.T + b).  x: (B, K), V: (N, K), b: (N,)."""
    B, K = x.shape
    N, K2 = V.shape
    assert K == K2 and b.shape == (N,)
    compute_dtype = jnp.dtype(compute_dtype)
    out_dtype = jnp.dtype(out_dtype or x.dtype)
    in_size = jnp.dtype(x.dtype).itemsize
    w_size = jnp.dtype(V.dtype).itemsize
    o_size = out_dtype.itemsize

    # -- Generation-aware VMEM budgets (v5e/v6e: 128 MiB, v7x: 64 MiB).
    vmem_cap = _vmem_capacity_bytes()
    tile_budget = vmem_cap // 2
    vmem_limit = int(min(vmem_cap * 0.75, vmem_cap - 8 * 1024 * 1024))

    # -- K tiling: CDAE hidden dims are small -> take all of K in one dot.
    if tk is None:
        tk = K if K <= 4096 else 512
    single_pass = tk >= K
    if single_pass:
        tk_eff, Kp = K, K
    else:
        tk_eff = _round_up(tk, 128)
        Kp = _round_up(K, tk_eff)

    # -- N tiling: single full-N block whenever the V tile fits (no padding,
    #    no output column slice, only a masked final store if N % 128 != 0).
    if tn is None:
        if 2 * N * tk_eff * w_size <= tile_budget // 3:
            tn = N
        else:
            tn = max(128, ((tile_budget // 3) // (2 * tk_eff * w_size)) // 128 * 128)
            tn = min(tn, _round_up(N, 128))
    if tn >= N:
        tn, num_j = N, 1
    else:
        tn = _round_up(tn, 128)
        num_j = _cdiv(N, tn)
    Np = num_j * tn

    # -- Batch tiling: budget-derived cap, then balanced so padding <= 8 rows
    #    per tile.  per_row explicitly covers x, output, and the f32 z/exp/acc
    #    intermediates (double-buffered where pipelined).
    fixed = 2 * tn * tk_eff * w_size + 2 * tn * 4
    per_row = 2 * tk_eff * in_size + 2 * tn * o_size + 3 * tn * 4
    if tm is None:
        tm_cap = max(8, ((tile_budget - fixed) // max(per_row, 1)) // 8 * 8)
        if B <= tm_cap:
            tm, num_i = B, 1
        else:
            num_i = _cdiv(B, tm_cap)
            tm = _round_up(_cdiv(B, num_i), 8)
    else:
        if tm >= B:
            tm, num_i = B, 1
        else:
            tm = _round_up(tm, 8)
            num_i = _cdiv(B, tm)
    Bp = num_i * tm

    # -- Operands go to the kernel in their native dtypes (in-kernel cast).
    #    Padding only when strictly required (ragged batch or tiled N/K).
    xk, vk, bk = x, V, b.reshape(1, N)
    if Bp != B or Kp != K:
        xk = jnp.pad(xk, ((0, Bp - B), (0, Kp - K)))
    if Np != N or Kp != K:
        # TODO(synk): for production shapes that hit this path, store V / b
        # pre-padded offline so this copy is not paid per call.
        vk = jnp.pad(vk, ((0, Np - N), (0, Kp - K)))
    if Np != N:
        bk = jnp.pad(bk, ((0, 0), (0, Np - N)))

    kernel_kwargs = dict(
        compute_dtype=compute_dtype,
        approx=(compute_dtype != jnp.dtype(jnp.float32)),
    )
    common = dict(
        out_shape=jax.ShapeDtypeStruct((Bp, Np), out_dtype),
        compiler_params=pltpu.CompilerParams(
            dimension_semantics=(("parallel", "parallel") if single_pass
                                 else ("parallel", "parallel", "arbitrary")),
            vmem_limit_bytes=vmem_limit,
        ),
    )

    # Deep inner batch loop with tiny per-step compute: triple-buffer x.
    x_bufs = 3 if (single_pass and num_i >= 4 and K <= 256) else None

    if single_pass:
        out = pl.pallas_call(
            functools.partial(_decoder_kernel_single_pass, **kernel_kwargs),
            grid_spec=pltpu.PrefetchScalarGridSpec(
                num_scalar_prefetch=0,
                grid=(num_j, num_i),                                   # j outer -> V resident
                in_specs=[
                    _block_spec((tm, Kp), lambda j, i: (i, 0), x_bufs),  # x
                    _block_spec((tn, Kp), lambda j, i: (j, 0)),          # V (native (N, K))
                    _block_spec((1, tn), lambda j, i: (0, j)),           # bias
                ],
                out_specs=pl.BlockSpec((tm, tn), lambda j, i: (i, j)),
            ),
            **common,
        )(xk, vk, bk)
    else:
        out = pl.pallas_call(
            functools.partial(_decoder_kernel_ktiled, **kernel_kwargs),
            grid_spec=pltpu.PrefetchScalarGridSpec(
                num_scalar_prefetch=0,
                grid=(num_j, num_i, Kp // tk_eff),
                in_specs=[
                    pl.BlockSpec((tm, tk_eff), lambda j, i, k: (i, k)),  # x
                    pl.BlockSpec((tn, tk_eff), lambda j, i, k: (j, k)),  # V
                    pl.BlockSpec((1, tn), lambda j, i, k: (0, j)),       # bias
                ],
                out_specs=pl.BlockSpec((tm, tn), lambda j, i, k: (i, j)),
                scratch_shapes=[pltpu.VMEM((tm, tn), jnp.float32)],
            ),
            **common,
        )(xk, vk, bk)

    if Bp != B or Np != N:
        out = out[:B, :N]
    return out


def decoder_reference(x, V, b):
    return jax.nn.sigmoid(x @ V.T + b)


if __name__ == "__main__":
    key = jax.random.PRNGKey(0)
    k1, k2, k3, k4, k5, k6 = jax.random.split(key, 6)

    # --- Case 1: canonical CDAE decoder shape (small K, N not a multiple of
    # 128).  Single-pass kernel, single full-N tile, single batch tile:
    # no padding, no slicing, no wrapper-side cast, weight streamed once.
    B1, K1, N1 = 32, 48, 300
    scale1 = 4.0 * math.sqrt(6.0 / (K1 + N1))     # matches the PyTorch init
    V1 = jax.random.uniform(k1, (N1, K1), jnp.float32) * scale1
    b1 = jnp.zeros((N1,), jnp.float32)
    x1 = jax.random.normal(k2, (B1, K1), jnp.float32)
    ref1 = decoder_reference(x1, V1, b1)

    out1 = jax.block_until_ready(decoder_forward(x1, V1, b1))
    assert out1.shape == (B1, N1) and out1.dtype == x1.dtype
    assert jnp.allclose(out1, ref1, atol=2e-2, rtol=2e-2), "case1 bf16 mismatch"

    # Same case with f32 compute (exact reciprocal): tight match expected.
    out1_f32 = jax.block_until_ready(
        decoder_forward(x1, V1, b1, compute_dtype=jnp.float32))
    assert jnp.allclose(out1_f32, ref1, atol=1e-5, rtol=1e-5), "case1 f32 mismatch"

    # One-time weight prep outside the per-step path (no per-call cast at all).
    V1p, b1p = prepare_decoder_params(V1, b1)
    out1_prep = jax.block_until_ready(decoder_forward(x1, V1p, b1p))
    assert jnp.allclose(out1_prep, ref1, atol=2e-2, rtol=2e-2), "case1 prep mismatch"

    # --- Case 2: K-tiled accumulator fallback (forced tk) + nonzero bias.
    B2, K2, N2 = 16, 384, 256
    scale2 = 4.0 * math.sqrt(6.0 / (K2 + N2))
    V2 = jax.random.uniform(k3, (N2, K2), jnp.float32) * scale2
    b2 = jax.random.normal(k4, (N2,), jnp.float32) * 0.1
    x2 = jax.random.normal(k5, (B2, K2), jnp.float32)
    ref2 = decoder_reference(x2, V2, b2)
    out2 = jax.block_until_ready(decoder_forward(x2, V2, b2, tk=128))
    assert out2.shape == (B2, N2)
    assert jnp.allclose(out2, ref2, atol=2e-2, rtol=2e-2), "case2 mismatch"

    # --- Case 3: multi i-tile grid (j outermost, batch innermost) with a batch
    # size that does not divide the tile -> padded x rows + row slice only.
    B3 = 40
    x3 = jax.random.normal(k6, (B3, K1), jnp.float32)
    ref3 = decoder_reference(x3, V1, b1)
    out3 = jax.block_until_ready(decoder_forward(x3, V1, b1, tm=16))
    assert out3.shape == (B3, N1)
    assert jnp.allclose(out3, ref3, atol=2e-2, rtol=2e-2), "case3 mismatch"

    print("KERNEL_OK")
</pallas_src>

<mosaic_0001>
module attributes {stable_mosaic.version = 11 : i64} {
  func.func @_decoder_kernel_single_pass(%arg0: i32, %arg1: i32, %arg2: memref<32x48xf32, #tpu.memory_space<vmem>>, %arg3: memref<300x48xf32, #tpu.memory_space<vmem>>, %arg4: memref<1x300xf32, #tpu.memory_space<vmem>>, %arg5: memref<32x300xf32, #tpu.memory_space<vmem>>) attributes {dimension_semantics = [#tpu.dimension_semantics<parallel>, #tpu.dimension_semantics<parallel>], iteration_bounds = array<i64: 1, 1>, scalar_prefetch = 0 : i64, scratch_operands = 0 : i64, tpu.core_type = #tpu.core_type<tc>, window_params = [{transform_indices = @transform_0, window_bounds = array<i64: 32, 48>}, {transform_indices = @transform_1, window_bounds = array<i64: 300, 48>}, {transform_indices = @transform_2, window_bounds = array<i64: 1, 300>}, {transform_indices = @transform_3, window_bounds = array<i64: 32, 300>}]} {
    %c0 = arith.constant 0 : index
    %c0_0 = arith.constant 0 : index
    %0 = vector.load %arg2[%c0, %c0_0] : memref<32x48xf32, #tpu.memory_space<vmem>>, vector<32x48xf32>
    %1 = arith.truncf %0 : vector<32x48xf32> to vector<32x48xbf16>
    %c0_1 = arith.constant 0 : index
    %c0_2 = arith.constant 0 : index
    %2 = vector.load %arg3[%c0_1, %c0_2] : memref<300x48xf32, #tpu.memory_space<vmem>>, vector<300x48xf32>
    %3 = arith.truncf %2 : vector<300x48xf32> to vector<300x48xbf16>
    %cst = arith.constant dense<0.000000e+00> : vector<32x300xf32>
    %4 = tpu.matmul %1, %3, %cst {dimension_numbers = #tpu.dot_dimension_numbers<[1], [1], [0], [0], [0, 0, 1, 0], [], []>} : vector<32x48xbf16>, vector<300x48xbf16>, vector<32x300xf32> -> vector<32x300xf32>
    %c0_3 = arith.constant 0 : index
    %c0_4 = arith.constant 0 : index
    %5 = vector.load %arg4[%c0_3, %c0_4] : memref<1x300xf32, #tpu.memory_space<vmem>>, vector<1x300xf32>
    %6 = vector.broadcast %5 : vector<1x300xf32> to vector<32x300xf32>
    %7 = arith.addf %4, %6 : vector<32x300xf32>
    %cst_5 = arith.constant 0.000000e+00 : f32
    %8 = vector.broadcast %cst_5 : f32 to vector<32x300xf32>
    %9 = arith.subf %8, %7 : vector<32x300xf32>
    %10 = math.exp %9 : vector<32x300xf32>
    %cst_6 = arith.constant 1.000000e+00 : f32
    %11 = vector.broadcast %cst_6 : f32 to vector<32x300xf32>
    %12 = arith.addf %11, %10 : vector<32x300xf32>
    %13 = tpu.reciprocal %12 {approx = true} : vector<32x300xf32> -> vector<32x300xf32>
    %c0_7 = arith.constant 0 : index
    %c0_8 = arith.constant 0 : index
    %14 = vector.load %arg5[%c0_7, %c0_8] : memref<32x300xf32, #tpu.memory_space<vmem>>, vector<32x300xf32>
    tpu.vector_store %arg5[%c0_7, %c0_8], %13 {strides = array<i32>} : memref<32x300xf32, #tpu.memory_space<vmem>>, vector<32x300xf32>,
    return
  }
  func.func @transform_0(%arg0: i32, %arg1: i32) -> (i32, i32) {
    %c0_i32 = arith.constant 0 : i32
    %c0_i32_0 = arith.constant 0 : i32
    return %arg1, %c0_i32 : i32, i32
  }
  func.func @transform_1(%arg0: i32, %arg1: i32) -> (i32, i32) {
    %c0_i32 = arith.constant 0 : i32
    %c0_i32_0 = arith.constant 0 : i32
    return %arg0, %c0_i32 : i32, i32
  }
  func.func @transform_2(%arg0: i32, %arg1: i32) -> (i32, i32) {
    %c0_i32 = arith.constant 0 : i32
    %c0_i32_0 = arith.constant 0 : i32
    return %c0_i32, %arg0 : i32, i32
  }
  func.func @transform_3(%arg0: i32, %arg1: i32) -> (i32, i32) {
    %c0_i32 = arith.constant 0 : i32
    return %arg1, %arg0 : i32, i32
  }
}

</mosaic_0001>

<bundles_post_ra>
// kernel: decoder_forward.1
= control target key start
LH: loop header
LB: loop body
LE: loop exit
PB: predicated region body
PF: predicated region fallthrough
CT: control target
= control target key end

     0   :  { %vm96_vm0 = vcmask 392192   ;;  %s661_s0 = inlined_call_operand.vmem [shape: f32[32,48], index: 0, kind: input, shape index: {}]   ;;  %s662_s1 = inlined_call_operand.vmem [shape: f32[300,48], index: 1, kind: input, shape index: {}]   ;;  %s663_s2 = inlined_call_operand.vmem [shape: f32[1,300], index: 2, kind: input, shape index: {}]   ;;  %s664_s3 = inlined_call_operand.hbm [shape: f32[32,300], index: 3, kind: output, shape index: {}]  }
   0x1   :  { %v52_v0 = vld [vmem:[%s662_s1 + $0xf0] sm:$0xff]  ;;  %v53_v1 = vld [vmem:[%s662_s1 + $0xf8] sm:$0xff]  ;;  %v50_v5 = vld [vmem:[%s662_s1 + $0xe0] sm:$0xff] }
   0x2   :  { %v36_v2 = vld [vmem:[%s662_s1 + $0x70] sm:$0xff]  ;;  %v75_v3 = vpack.c.bf16 %v53_v1, %v52_v0  ;;  %v37_v4 = vld [vmem:[%s662_s1 + $0x78] sm:$0xff]  ;;  %v51_v6 = vld [vmem:[%s662_s1 + $0xe8] sm:$0xff] }
   0x3   :  { %v67_v7 = vpack.c.bf16 %v37_v4, %v36_v2  ;;  %v74_v8 = vpack.c.bf16 %v51_v6, %v50_v5  ;;  %v34_v9 = vld [vmem:[%s662_s1 + $0x60] sm:$0xff]  ;;  %v35_v10 = vld [vmem:[%s662_s1 + $0x68] sm:$0xff]  ;;  %v48_v13 = vld [vmem:[%s662_s1 + $0xd0] sm:$0xff] }
   0x4   :  { %390 = vmatprep.subr.msk.bf16.mxu0 %vm96_vm0, %v75_v3  ;;  %v66_v12 = vpack.c.bf16 %v35_v10, %v34_v9  ;;  %v49_v14 = vld [vmem:[%s662_s1 + $0xd8] sm:$0xff]  ;;  %v58_v15 = vld [vmem:[%s662_s1 + $0x120] sm:$0xff]  ;;  %v59_v16 = vld [vmem:[%s662_s1 + $0x128] sm:$0xf] }
   0x5   :  { %v125_v11 = vsel %vm96_vm0, %v67_v7, 0  ;;  %v78_v17 = vpack.c.bf16 %v59_v16, %v58_v15  ;;  %v73_v19 = vpack.c.bf16 %v49_v14, %v48_v13  ;;  %v56_v20 = vld [vmem:[%s662_s1 + $0x110] sm:$0xff]  ;;  %v57_v21 = vld [vmem:[%s662_s1 + $0x118] sm:$0xff]  ;;  %v16_v26 = vld [vmem:[%s661_s0] sm:$0xff] }
   0x6   :  { %356 = vmatpush3.bf16.xpose.msra.mxu0 %v125_v11  ;;  %v122_v18 = vsel %vm96_vm0, %v66_v12, 0  ;;  %v32_v22 = vld [vmem:[%s662_s1 + $0x50] sm:$0xff]  ;;  %v33_v23 = vld [vmem:[%s662_s1 + $0x58] sm:$0xff]  ;;  %v77_v25 = vpack.c.bf16 %v57_v21, %v56_v20  ;;  %v17_v27 = vld [vmem:[%s661_s0 + $0x8] sm:$0xff] }
   0x7   :  { %391 = vmatprep.subr.msk.bf16.mxu0 %vm96_vm0, %v74_v8  ;;  %398 = vmatprep.subr.msk.bf16.mxu1 %vm96_vm0, %v78_v17  ;;  %v158_v24 = vsel %vm96_vm0, %v78_v17, 0  ;;  %v65_v28 = vpack.c.bf16 %v33_v23, %v32_v22  ;;  %v54_v29 = vld [vmem:[%s662_s1 + $0x100] sm:$0xff]  ;;  %v55_v30 = vld [vmem:[%s662_s1 + $0x108] sm:$0xff]  ;;  %v20_v31 = vpack.c.bf16 %v17_v27, %v16_v26 }
   0x8   :  { %381 = vmatpush3.bf16.xpose.msra.mxu1 %v158_v24 }
   0x9   :  { %399 = vmatprep.subr.msk.bf16.mxu1 %vm96_vm0, %v77_v25 }
   0xe   :  { %358 = vmatpush3.bf16.xpose.msra.mxu0 %v122_v18 }
   0xf   :  { %392 = vmatprep.subr.msk.bf16.mxu0 %vm96_vm0, %v73_v19 }
  0x10   :  { %8 = vsyncpa [#allocation3], 0  ;;  %v46_v32 = vld [vmem:[%s662_s1 + $0xc0] sm:$0xff]  ;;  %v47_v33 = vld [vmem:[%s662_s1 + $0xc8] sm:$0xff]  ;;  %371 = vmatprep.mubr.msk.bf16.mxu0 %vm96_vm0, %v20_v31  ;;  %386 = vmatprep.mubr.msk.bf16.mxu1 %vm96_vm0, %v20_v31  ;;  %v155_v34 = vsel %vm96_vm0, %v77_v25, 0  ;;  %v76_v35 = vpack.c.bf16 %v55_v30, %v54_v29  ;;  %v119_v36 = vsel %vm96_vm0, %v65_v28, 0  ;;  %v81_v10 = vlaneseq }
  0x11   :  { %v72_v37 = vpack.c.bf16 %v47_v33, %v46_v32  ;;  %v30_v38 = vld [vmem:[%s662_s1 + $0x40] sm:$0xff]  ;;  %v31_v39 = vld [vmem:[%s662_s1 + $0x48] sm:$0xff]  ;;  %383 = vmatpush3.bf16.xpose.msra.mxu1 %v155_v34  ;;  %v44_v41 = vld [vmem:[%s662_s1 + $0xb0] sm:$0xff]  ;;  %vm324_vm1 = vcmask 359424  }
  0x12   :  { %400 = vmatprep.subr.msk.bf16.mxu1 %vm96_vm0, %v76_v35  ;;  %v64_v40 = vpack.c.bf16 %v31_v39, %v30_v38  ;;  %v45_v42 = vld [vmem:[%s662_s1 + $0xb8] sm:$0xff]  ;;  %v152_v43 = vsel %vm96_vm0, %v76_v35, 0  ;;  %v28_v46 = vld [vmem:[%s662_s1 + $0x30] sm:$0xff]  ;;  %v42_v51 = vld [vmem:[%s662_s1 + $0xa0] sm:$0xff]  ;;  %v82_v11 = vshrl.u32 %v81_v10, 7 }
  0x13   :  { %v71_v45 = vpack.c.bf16 %v45_v42, %v44_v41  ;;  %v29_v47 = vld [vmem:[%s662_s1 + $0x38] sm:$0xff]  ;;  %v18_v48 = vld [vmem:[%s661_s0 + $0x10] sm:$0xff]  ;;  %v43_v52 = vld [vmem:[%s662_s1 + $0xa8] sm:$0xff] }
  0x14   :  { %v116_v44 = vsel %vm96_vm0, %v64_v40, 0  ;;  %v19_v49 = vld [vmem:[%s661_s0 + $0x18] sm:$0xff]  ;;  %v63_v50 = vpack.c.bf16 %v29_v47, %v28_v46  ;;  %v70_v55 = vpack.c.bf16 %v43_v52, %v42_v51  ;;  %v26_v56 = vld [vmem:[%s662_s1 + $0x20] sm:$0xff]  ;;  %v27_v57 = vld [vmem:[%s662_s1 + $0x28] sm:$0xff]  ;;  %v91_v12 = vsub.s32 2, %v82_v11 }
  0x15   :  { %v21_v53 = vpack.c.bf16 %v19_v49, %v18_v48  ;;  %v62_v58 = vpack.c.bf16 %v27_v57, %v26_v56  ;;  %v40_v59 = vld [vmem:[%s662_s1 + $0x90] sm:$0xff]  ;;  %v41_v60 = vld [vmem:[%s662_s1 + $0x98] sm:$0xff]  ;;  %v38_v2 = vld [vmem:[%s662_s1 + $0x80] sm:$0xff]  ;;  %v83_v38 = vsub.s32 0, %v82_v11  ;;  %v87_v40 = vsub.s32 1, %v82_v11 }
  0x16   :  { %360 = vmatpush3.bf16.xpose.msra.mxu0 %v119_v36  ;;  %v113_v54 = vsel %vm96_vm0, %v63_v50, 0  ;;  %v69_v62 = vpack.c.bf16 %v41_v60, %v40_v59  ;;  %v24_v63 = vld [vmem:[%s662_s1 + $0x10] sm:$0xff]  ;;  %v25_v0 = vld [vmem:[%s662_s1 + $0x18] sm:$0xff]  ;;  %v39_v3 = vld [vmem:[%s662_s1 + $0x88] sm:$0xff] }
  0x17   :  { %393 = vmatprep.subr.msk.bf16.mxu0 %vm96_vm0, %v72_v37  ;;  %v110_v61 = vsel %vm96_vm0, %v62_v58, 0  ;;  %v61_v1 = vpack.c.bf16 %v25_v0, %v24_v63  ;;  %v68_v5 = vpack.c.bf16 %v39_v3, %v38_v2  ;;  %v22_v6 = vld [vmem:[%s662_s1] sm:$0xff]  ;;  %v23_v7 = vld [vmem:[%s662_s1 + $0x8] sm:$0xff]  ;;  %s474_s1 = smov [#allocation2]  }
  0x18   :  { %v60_v8 = vpack.c.bf16 %v23_v7, %v22_v6  ;;  %v79_v13 = vld [vmem:[%s663_s2] sm:$0x7]  ;;  %s340_s2 = sshll.u32 %s474_s1, 4  ;;  %s341_s2 = int_to_ptr.vmem [resolvable:$true] %s340_s2 }
  0x19   :  { %385 = vmatpush3.bf16.xpose.msra.mxu1 %v152_v43  ;;  %v107_v4 = vsel %vm96_vm0, %v61_v1, 0  ;;  %v92_v14 = vrot.slane %v79_v13, %v91_v12  ;;  %v84_v41 = vrot.slane %v79_v13, %v83_v38  ;;  %v88_v42 = vrot.slane %v79_v13, %v87_v40  ;;  %s452_s16 = scalar_lea.vmem %s341_s2, 1536  ;;  %p457_p1 = scmp.lt.s32.totalorder %s341_s2, %s341_s2 }
  0x1a   :  { %v104_v9 = vsel %vm96_vm0, %v60_v8, 0  ;;  %p453_p0 = scmp.ne.s32.totalorder %s341_s2, %s452_s16  ;;  %p458_p2 = scmp.lt.s32.totalorder %s452_s16, %s452_s16 }
  0x1c   :  { %p459_p3 = por %p458_p2, %p457_p1 }
  0x1e   :  { %362 = vmatpush3.bf16.xpose.msra.mxu0 %v116_v44  ;;  %p460_p4 = pnand %p459_p3, %p453_p0 }
  0x1f   :  { %394 = vmatprep.subr.msk.bf16.mxu0 %vm96_vm0, %v71_v45 }
  0x20   :  { %387 = vmatmul.mubr.msk.bf16.vlgmr.msra.gmra.mxu1 %vm96_vm0, %v21_v53 }
  0x26   :  { %364 = vmatpush3.bf16.xpose.msra.mxu0 %v113_v54 }
  0x27   :  { %395 = vmatprep.subr.msk.bf16.mxu0 %vm96_vm0, %v70_v55 }
  0x2e   :  { %366 = vmatpush3.bf16.xpose.msra.mxu0 %v110_v61 }
  0x2f   :  { %396 = vmatprep.subr.msk.bf16.mxu0 %vm96_vm0, %v69_v62 }
  0x36   :  { %368 = vmatpush3.bf16.xpose.msra.mxu0 %v107_v4 }
  0x37   :  { %397 = vmatprep.subr.msk.bf16.mxu0 %vm96_vm0, %v68_v5 }
  0x3e   :  { %370 = vmatpush3.bf16.xpose.msra.mxu0 %v104_v9 }
  0x45   :  { %372 = vmatmul.mubr.msk.bf16.vlgmr.msra.gmra.mxu0 %vm96_vm0, %v20_v31 }
  0x46   :  { %373 = vmatprep.mubr.msk.bf16.mxu0 %vm96_vm0, %v21_v53 }
  0x4d   :  { %374 = vmatmul.mubr.msk.bf16.gmra.mxu0 %vm96_vm0, %v21_v53 }
  0xe0   :  { %v388_v15 = vpop.f32.mrf.mxu1 }
  0xe1   :  { %v256_v16 = vadd.f32 %v388_v15, %v92_v14 }
  0xe2   :  { %v247_v17 = vpop.f32.mrf.mxu1 }
  0xe3   :  { %v270_v18 = vsub.f32 0.0, %v256_v16  ;;  %v248_v19 = vadd.f32 %v247_v17, %v92_v14 }
  0xe4   :  { %v389_v20 = vpop.f32.mrf.mxu1 }
  0xe5   :  { %v290_v21 = vmul.f32 1.442695, %v270_v18  ;;  %v264_v22 = vsub.f32 0.0, %v248_v19  ;;  %v259_v23 = vadd.f32 %v389_v20, %v92_v14 }
  0xe6   :  { %v250_v24 = vpop.f32.mrf.mxu1 }
  0xe7   :  { %404 = vpow2.f32 %v290_v21  ;;  %v278_v25 = vmul.f32 1.442695, %v264_v22  ;;  %v273_v26 = vsub.f32 0.0, %v259_v23  ;;  %v251_v27 = vadd.f32 %v250_v24, %v92_v14 }
  0xe9   :  { %406 = vpow2.f32 %v278_v25  ;;  %v296_v28 = vmul.f32 1.442695, %v273_v26  ;;  %v267_v29 = vsub.f32 0.0, %v251_v27 }
  0xeb   :  { %408 = vpow2.f32 %v296_v28  ;;  %v284_v30 = vmul.f32 1.442695, %v267_v29 }
  0xed   :  { %410 = vpow2.f32 %v284_v30 }
  0xf4   :  { %v405_v31 = vpop.eup %404 }
  0xf5   :  { %v306_v32 = vadd.f32 1.0, %v405_v31 }
  0xf6   :  { %v407_v33 = vpop.eup %406 }
  0xf7   :  { %412 = vrcp.f32 %v306_v32  ;;  %v300_v34 = vadd.f32 1.0, %v407_v33 }
  0xf8   :  { %v409_v35 = vpop.eup %408 }
  0xf9   :  { %414 = vrcp.f32 %v300_v34  ;;  %v309_v36 = vadd.f32 1.0, %v409_v35 }
  0xfa   :  { %v411_v37 = vpop.eup %410 }
  0xfb   :  { %416 = vrcp.f32 %v309_v36  ;;  %v303_v39 = vadd.f32 1.0, %v411_v37 }
  0xfd   :  { %418 = vrcp.f32 %v303_v39 }
 0x104   :  { %v413_v46 = vpop.eup %412 }
 0x105   :  { %v194_v43 = vpop.f32.mrf.mxu0  ;;  %331 = vst.msk [vmem:[#allocation2 + $0x40] sm:$0xff] %vm324_vm1, %v413_v46 }
 0x106   :  { %v195_v44 = vadd.f32 %v194_v43, %v84_v41  ;;  %v415_v50 = vpop.eup %414 }
 0x107   :  { %v196_v45 = vpop.f32.mrf.mxu0  ;;  %325 = vst.msk [vmem:[#allocation2 + $0x10] sm:$0xff] %vm324_vm1, %v415_v50 }
 0x108   :  { %v262_v47 = vsub.f32 0.0, %v195_v44  ;;  %v197_v48 = vadd.f32 %v196_v45, %v88_v42  ;;  %v417_v55 = vpop.eup %416 }
 0x109   :  { %v198_v49 = vpop.f32.mrf.mxu0  ;;  %334 = vst.msk [vmem:[#allocation2 + $0x58] sm:$0xff] %vm324_vm1, %v417_v55 }
 0x10a   :  { %v274_v51 = vmul.f32 1.442695, %v262_v47  ;;  %v263_v52 = vsub.f32 0.0, %v197_v48  ;;  %v199_v53 = vadd.f32 %v198_v49, %v84_v41  ;;  %v419_v60 = vpop.eup %418 }
 0x10b   :  { %v200_v54 = vpop.f32.mrf.mxu0  ;;  %328 = vst.msk [vmem:[#allocation2 + $0x28] sm:$0xff] %vm324_vm1, %v419_v60 }
 0x10c   :  { %420 = vpow2.f32 %v274_v51  ;;  %v276_v56 = vmul.f32 1.442695, %v263_v52  ;;  %v265_v57 = vsub.f32 0.0, %v199_v53  ;;  %v201_v58 = vadd.f32 %v200_v54, %v88_v42 }
 0x10d   :  { %v204_v59 = vpop.f32.mrf.mxu0 }
 0x10e   :  { %422 = vpow2.f32 %v276_v56  ;;  %v280_v61 = vmul.f32 1.442695, %v265_v57  ;;  %v266_v62 = vsub.f32 0.0, %v201_v58  ;;  %v205_v63 = vadd.f32 %v204_v59, %v84_v41 }
 0x10f   :  { %v206_v0 = vpop.f32.mrf.mxu0 }
 0x110   :  { %424 = vpow2.f32 %v280_v61  ;;  %v282_v1 = vmul.f32 1.442695, %v266_v62  ;;  %v268_v2 = vsub.f32 0.0, %v205_v63  ;;  %v207_v3 = vadd.f32 %v206_v0, %v88_v42 }
 0x111   :  { %v208_v4 = vpop.f32.mrf.mxu0 }
 0x112   :  { %426 = vpow2.f32 %v282_v1  ;;  %v286_v5 = vmul.f32 1.442695, %v268_v2  ;;  %v269_v6 = vsub.f32 0.0, %v207_v3  ;;  %v209_v7 = vadd.f32 %v208_v4, %v84_v41 }
 0x113   :  { %v210_v8 = vpop.f32.mrf.mxu0 }
 0x114   :  { %428 = vpow2.f32 %v286_v5  ;;  %v288_v9 = vmul.f32 1.442695, %v269_v6  ;;  %v271_v10 = vsub.f32 0.0, %v209_v7  ;;  %v211_v11 = vadd.f32 %v210_v8, %v88_v42 }
 0x116   :  { %430 = vpow2.f32 %v288_v9  ;;  %v292_v12 = vmul.f32 1.442695, %v271_v10  ;;  %v272_v13 = vsub.f32 0.0, %v211_v11 }
 0x118   :  { %432 = vpow2.f32 %v292_v12  ;;  %v294_v14 = vmul.f32 1.442695, %v272_v13 }
 0x119   :  { %v421_v15 = vpop.eup %420 }
 0x11a   :  { %v298_v16 = vadd.f32 1.0, %v421_v15  ;;  %434 = vpow2.f32 %v294_v14 }
 0x11b   :  { %v423_v17 = vpop.eup %422 }
 0x11c   :  { %436 = vrcp.f32 %v298_v16  ;;  %v299_v18 = vadd.f32 1.0, %v423_v17 }
 0x11d   :  { %v425_v19 = vpop.eup %424 }
 0x11e   :  { %438 = vrcp.f32 %v299_v18  ;;  %v301_v20 = vadd.f32 1.0, %v425_v19 }
 0x11f   :  { %v427_v21 = vpop.eup %426 }
 0x120   :  { %440 = vrcp.f32 %v301_v20  ;;  %v302_v22 = vadd.f32 1.0, %v427_v21 }
 0x121   :  { %v429_v23 = vpop.eup %428 }
 0x122   :  { %442 = vrcp.f32 %v302_v22  ;;  %v304_v24 = vadd.f32 1.0, %v429_v23 }
 0x123   :  { %v431_v25 = vpop.eup %430 }
 0x124   :  { %444 = vrcp.f32 %v304_v24  ;;  %v305_v26 = vadd.f32 1.0, %v431_v25 }
 0x125   :  { %v433_v27 = vpop.eup %432 }
 0x126   :  { %446 = vrcp.f32 %v305_v26  ;;  %v307_v28 = vadd.f32 1.0, %v433_v27 }
 0x127   :  { %v435_v29 = vpop.eup %434 }
 0x128   :  { %448 = vrcp.f32 %v307_v28  ;;  %v308_v30 = vadd.f32 1.0, %v435_v29 }
 0x129   :  { %v437_v31 = vpop.eup %436 }
 0x12a   :  { %322 = vst [vmem:[#allocation2] sm:$0xff] %v437_v31  ;;  %450 = vrcp.f32 %v308_v30 }
 0x12b   :  { %v439_v32 = vpop.eup %438 }
 0x12c   :  { %323 = vst [vmem:[#allocation2 + $0x8] sm:$0xff] %v439_v32 }
 0x12d   :  { %v441_v33 = vpop.eup %440 }
 0x12e   :  { %326 = vst [vmem:[#allocation2 + $0x18] sm:$0xff] %v441_v33 }
 0x12f   :  { %v443_v34 = vpop.eup %442 }
 0x130   :  { %327 = vst [vmem:[#allocation2 + $0x20] sm:$0xff] %v443_v34 }
 0x131   :  { %v445_v35 = vpop.eup %444 }
 0x132   :  { %329 = vst [vmem:[#allocation2 + $0x30] sm:$0xff] %v445_v35 }
 0x133   :  { %v447_v36 = vpop.eup %446 }
 0x134   :  { %330 = vst [vmem:[#allocation2 + $0x38] sm:$0xff] %v447_v36 }
 0x135   :  { %v449_v37 = vpop.eup %448 }
 0x136   :  { %332 = vst [vmem:[#allocation2 + $0x48] sm:$0xff] %v449_v37 }
 0x137   :  { %v451_v38 = vpop.eup %450 }
 0x138   :  { %333 = vst [vmem:[#allocation2 + $0x50] sm:$0xff] %v451_v38 }
 0x139   :  { %463 = shalt.err (!%p460_p4)
}
 0x13a   :  { %s475_s17 = smov 384   ;;  %s476_s18 = smov 24  }
 0x13b   :  { %346 = dma.vmem_to_hbm [thread:$0]  %s341_s2, 1536, %s664_s3, [#allocation3], %s475_s17, %s475_s17, %s476_s18  }
 0x13c   :  { %472 = dma.done.wait [#allocation3], 1536  }
 0x13d   :  { %473 = vsyncadd [#allocation3], 4294965760 }
 0x13e   :  { %350 = vsyncpa [#allocation3], 1 }

</bundles_post_ra>
